<compile_context>
chip_gen: v6e
topology: v6e:2x2x1
jax: 0.10.0
libtpu: 0.0.40
codegen_flags: <defaults>
</compile_context>

<pallas_src>
import jax
import jax.numpy as jnp
from jax import lax
from jax.experimental import pallas as pl
from jax.experimental.pallas import tpu as pltpu


def _dice_kernel(x_ref, lab_ref, out_ref):
    # x_ref:   (1, C, T)       f32 logits tile
    # lab_ref: (1, 1, T)       i32 class-id tile
    # out_ref: (1, 2, C, 128)  f32 accumulator: row 0 = num, row 1 = den
    t = pl.program_id(1)

    @pl.when(t == 0)
    def _():
        out_ref[...] = jnp.zeros_like(out_ref)

    xf = x_ref[0]          # (C, T)
    labf = lab_ref[0]      # (1, T)
    C, T = xf.shape

    # --- softmax over the channel (sublane) axis; per-pixel, so tiling the
    # spatial axis is exact ---
    m = jnp.max(xf, axis=0, keepdims=True)
    e = jnp.exp(xf - m)
    p = e / jnp.sum(e, axis=0, keepdims=True)                   # (C, T)

    # --- one-hot of labels along channels (torch scatter_ on dim 1) ---
    ch = lax.broadcasted_iota(jnp.int32, (C, T), 0)
    y = (labf == ch).astype(jnp.float32)                        # (C, T)

    # --- partial Dice sums over this spatial tile (cross-lane reduce) ---
    num_part = 2.0 * jnp.sum(p * y, axis=1, keepdims=True)      # (C, 1)
    den_part = jnp.sum(p + y, axis=1, keepdims=True)            # (C, 1)

    # Accumulate lane-dense: (C, 1) broadcasts across the 128 output lanes, so
    # the writeback is a full unmasked store.
    out_ref[0, 0] += num_part
    out_ref[0, 1] += den_part


def _pick_spatial_tile(hw, target=8 * 1024):
    """Largest multiple of 128 that divides hw and is <= target; else hw."""
    if hw <= target:
        return hw
    best = None
    t = 128
    while t <= target:
        if hw % t == 0:
            best = t
        t += 128
    return best if best is not None else hw


def dice_loss(x, y_):
    """Forward pass of DiceLoss (softmax + one-hot Dice)."""
    B, C, H, W = x.shape
    HW = H * W

    x2 = x.astype(jnp.float32).reshape(B, C, HW)     # layout plumbing only
    lab2 = y_.astype(jnp.int32).reshape(B, 1, HW)

    thw = _pick_spatial_tile(HW)
    n_tiles = HW // thw

    out = pl.pallas_call(
        _dice_kernel,
        out_shape=jax.ShapeDtypeStruct((B, 2, C, 128), jnp.float32),
        grid_spec=pltpu.PrefetchScalarGridSpec(
            num_scalar_prefetch=0,
            grid=(B, n_tiles),                      # reduction (tile) axis last
            in_specs=[
                pl.BlockSpec((1, C, thw), lambda b, t: (b, 0, t)),
                pl.BlockSpec((1, 1, thw), lambda b, t: (b, 0, t)),
            ],
            out_specs=pl.BlockSpec((1, 2, C, 128), lambda b, t: (b, 0, 0, 0)),
        ),
        compiler_params=pltpu.CompilerParams(
            dimension_semantics=("parallel", "arbitrary")),
    )(x2, lab2)

    num = out[:, 0, :, 0]        # (B, C)
    den = out[:, 1, :, 0]        # (B, C)
    return 1.0 - jnp.mean(num / (den + 1e-6))


def _reference(x, y_):
    """Pure-JAX reference matching the PyTorch DiceLoss semantics."""
    x = x.astype(jnp.float32)
    B, C, H, W = x.shape
    p = jax.nn.softmax(x, axis=1)
    y = jax.nn.one_hot(y_[:, 0], C, axis=1, dtype=jnp.float32)   # (B, C, H, W)
    num = 2.0 * jnp.sum(p * y, axis=(2, 3))
    den = jnp.sum(p + y, axis=(2, 3))
    return 1.0 - jnp.mean(num / (den + 1e-6))


if __name__ == "__main__":
    B, C, H, W = 2, 4, 16, 16
    key = jax.random.PRNGKey(0)
    kx, ky = jax.random.split(key)
    x = jax.random.normal(kx, (B, C, H, W), dtype=jnp.float32)
    y_ = jax.random.randint(ky, (B, 1, H, W), 0, C, dtype=jnp.int32)

    loss = jax.block_until_ready(dice_loss(x, y_))
    ref = jax.block_until_ready(_reference(x, y_))
    assert jnp.allclose(loss, ref, atol=1e-4, rtol=1e-4), (loss, ref)
    print("KERNEL_OK")
</pallas_src>

<mosaic_0001>
module attributes {stable_mosaic.version = 11 : i64} {
  func.func @_dice_kernel(%arg0: i32, %arg1: i32, %arg2: memref<1x4x256xf32, #tpu.memory_space<vmem>>, %arg3: memref<1x1x256xi32, #tpu.memory_space<vmem>>, %arg4: memref<1x2x4x128xf32, #tpu.memory_space<vmem>>) attributes {dimension_semantics = [#tpu.dimension_semantics<parallel>, #tpu.dimension_semantics<arbitrary>], iteration_bounds = array<i64: 2, 1>, scalar_prefetch = 0 : i64, scratch_operands = 0 : i64, tpu.core_type = #tpu.core_type<tc>, window_params = [{transform_indices = @transform_0, window_bounds = array<i64: 1, 4, 256>}, {transform_indices = @transform_1, window_bounds = array<i64: 1, 1, 256>}, {transform_indices = @transform_2, window_bounds = array<i64: 1, 2, 4, 128>}]} {
    %c0_i32 = arith.constant 0 : i32
    %0 = arith.cmpi eq, %arg1, %c0_i32 : i32
    %1 = arith.extui %0 : i1 to i32
    %c0_i32_0 = arith.constant 0 : i32
    %2 = arith.cmpi ne, %1, %c0_i32_0 : i32
    scf.if %2 {
      %cst_25 = arith.constant 0.000000e+00 : f32
      %43 = vector.broadcast %cst_25 : f32 to vector<1x2x4x128xf32>
      %c0_26 = arith.constant 0 : index
      %c0_27 = arith.constant 0 : index
      %c0_28 = arith.constant 0 : index
      %c0_29 = arith.constant 0 : index
      %44 = vector.load %arg4[%c0_26, %c0_27, %c0_28, %c0_29] : memref<1x2x4x128xf32, #tpu.memory_space<vmem>>, vector<1x2x4x128xf32>
      tpu.vector_store %arg4[%c0_26, %c0_27, %c0_28, %c0_29], %43 {strides = array<i32>} : memref<1x2x4x128xf32, #tpu.memory_space<vmem>>, vector<1x2x4x128xf32>,
    } else {
    }
    %c0 = arith.constant 0 : index
    %c0_1 = arith.constant 0 : index
    %c0_2 = arith.constant 0 : index
    %3 = vector.load %arg2[%c0, %c0_1, %c0_2] : memref<1x4x256xf32, #tpu.memory_space<vmem>>, vector<1x4x256xf32>
    %4 = vector.shape_cast %3 : vector<1x4x256xf32> to vector<4x256xf32>
    %c0_3 = arith.constant 0 : index
    %c0_4 = arith.constant 0 : index
    %c0_5 = arith.constant 0 : index
    %5 = vector.load %arg3[%c0_3, %c0_4, %c0_5] : memref<1x1x256xi32, #tpu.memory_space<vmem>>, vector<1x1x256xi32>
    %6 = vector.shape_cast %5 : vector<1x1x256xi32> to vector<1x256xi32>
    %cst = arith.constant dense<0xFF800000> : vector<256xf32>
    %7 = vector.multi_reduction <maximumf>, %4, %cst [0] : vector<4x256xf32> to vector<256xf32>
    %8 = vector.shape_cast %7 : vector<256xf32> to vector<1x256xf32>
    %9 = vector.broadcast %8 : vector<1x256xf32> to vector<4x256xf32>
    %10 = arith.subf %4, %9 : vector<4x256xf32>
    %11 = math.exp %10 : vector<4x256xf32>
    %cst_6 = arith.constant dense<0.000000e+00> : vector<256xf32>
    %12 = vector.multi_reduction <add>, %11, %cst_6 [0] : vector<4x256xf32> to vector<256xf32>
    %13 = vector.shape_cast %12 : vector<256xf32> to vector<1x256xf32>
    %14 = vector.broadcast %13 : vector<1x256xf32> to vector<4x256xf32>
    %15 = arith.divf %11, %14 : vector<4x256xf32>
    %16 = tpu.iota {dimensions = array<i32: 0>} : vector<4x256xi32>
    %17 = vector.broadcast %6 : vector<1x256xi32> to vector<4x256xi32>
    %18 = arith.cmpi eq, %17, %16 : vector<4x256xi32>
    %19 = arith.extui %18 : vector<4x256xi1> to vector<4x256xi32>
    %20 = arith.sitofp %19 : vector<4x256xi32> to vector<4x256xf32>
    %21 = arith.mulf %15, %20 : vector<4x256xf32>
    %cst_7 = arith.constant dense<0.000000e+00> : vector<4xf32>
    %22 = vector.multi_reduction <add>, %21, %cst_7 [1] : vector<4x256xf32> to vector<4xf32>
    %23 = vector.shape_cast %22 : vector<4xf32> to vector<4x1xf32>
    %cst_8 = arith.constant 2.000000e+00 : f32
    %24 = vector.broadcast %cst_8 : f32 to vector<4x1xf32>
    %25 = arith.mulf %24, %23 : vector<4x1xf32>
    %26 = arith.addf %15, %20 : vector<4x256xf32>
    %cst_9 = arith.constant dense<0.000000e+00> : vector<4xf32>
    %27 = vector.multi_reduction <add>, %26, %cst_9 [1] : vector<4x256xf32> to vector<4xf32>
    %28 = vector.shape_cast %27 : vector<4xf32> to vector<4x1xf32>
    %c0_10 = arith.constant 0 : index
    %c0_11 = arith.constant 0 : index
    %c0_12 = arith.constant 0 : index
    %c0_13 = arith.constant 0 : index
    %29 = vector.load %arg4[%c0_10, %c0_11, %c0_12, %c0_13] : memref<1x2x4x128xf32, #tpu.memory_space<vmem>>, vector<1x1x4x128xf32>
    %30 = vector.shape_cast %29 : vector<1x1x4x128xf32> to vector<4x128xf32>
    %31 = vector.broadcast %25 : vector<4x1xf32> to vector<4x128xf32>
    %32 = arith.addf %30, %31 : vector<4x128xf32>
    %c0_14 = arith.constant 0 : index
    %c0_15 = arith.constant 0 : index
    %c0_16 = arith.constant 0 : index
    %c0_17 = arith.constant 0 : index
    %33 = vector.load %arg4[%c0_14, %c0_15, %c0_16, %c0_17] : memref<1x2x4x128xf32, #tpu.memory_space<vmem>>, vector<1x1x4x128xf32>
    %34 = vector.shape_cast %33 : vector<1x1x4x128xf32> to vector<4x128xf32>
    %35 = vector.shape_cast %32 : vector<4x128xf32> to vector<1x1x4x128xf32>
    tpu.vector_store %arg4[%c0_14, %c0_15, %c0_16, %c0_17], %35 {strides = array<i32>} : memref<1x2x4x128xf32, #tpu.memory_space<vmem>>, vector<1x1x4x128xf32>,
    %c0_18 = arith.constant 0 : index
    %c1 = arith.constant 1 : index
    %c0_19 = arith.constant 0 : index
    %c0_20 = arith.constant 0 : index
    %36 = vector.load %arg4[%c0_18, %c1, %c0_19, %c0_20] : memref<1x2x4x128xf32, #tpu.memory_space<vmem>>, vector<1x1x4x128xf32>
    %37 = vector.shape_cast %36 : vector<1x1x4x128xf32> to vector<4x128xf32>
    %38 = vector.broadcast %28 : vector<4x1xf32> to vector<4x128xf32>
    %39 = arith.addf %37, %38 : vector<4x128xf32>
    %c0_21 = arith.constant 0 : index
    %c1_22 = arith.constant 1 : index
    %c0_23 = arith.constant 0 : index
    %c0_24 = arith.constant 0 : index
    %40 = vector.load %arg4[%c0_21, %c1_22, %c0_23, %c0_24] : memref<1x2x4x128xf32, #tpu.memory_space<vmem>>, vector<1x1x4x128xf32>
    %41 = vector.shape_cast %40 : vector<1x1x4x128xf32> to vector<4x128xf32>
    %42 = vector.shape_cast %39 : vector<4x128xf32> to vector<1x1x4x128xf32>
    tpu.vector_store %arg4[%c0_21, %c1_22, %c0_23, %c0_24], %42 {strides = array<i32>} : memref<1x2x4x128xf32, #tpu.memory_space<vmem>>, vector<1x1x4x128xf32>,
    return
  }
  func.func @transform_0(%arg0: i32, %arg1: i32) -> (i32, i32, i32) {
    %c0_i32 = arith.constant 0 : i32
    %c0_i32_0 = arith.constant 0 : i32
    return %arg0, %c0_i32, %arg1 : i32, i32, i32
  }
  func.func @transform_1(%arg0: i32, %arg1: i32) -> (i32, i32, i32) {
    %c0_i32 = arith.constant 0 : i32
    %c0_i32_0 = arith.constant 0 : i32
    return %arg0, %c0_i32, %arg1 : i32, i32, i32
  }
  func.func @transform_2(%arg0: i32, %arg1: i32) -> (i32, i32, i32, i32) {
    %c0_i32 = arith.constant 0 : i32
    %c0_i32_0 = arith.constant 0 : i32
    %c0_i32_1 = arith.constant 0 : i32
    %c0_i32_2 = arith.constant 0 : i32
    return %arg0, %c0_i32, %c0_i32_0, %c0_i32_1 : i32, i32, i32, i32
  }
}

</mosaic_0001>

<bundles_post_ra>
// kernel: tpu_custom_call.1
= control target key start
LH: loop header
LB: loop body
LE: loop exit
PB: predicated region body
PF: predicated region fallthrough
CT: control target
= control target key end

     0   :  { %7 = vsyncpa [#allocation3], 0  ;;  %s908_s0 = inlined_call_operand.hbm [shape: f32[2,4,256], index: 0, kind: input, shape index: {}]   ;;  %s909_s1 = inlined_call_operand.hbm [shape: s32[2,1,256], index: 1, kind: input, shape index: {}]   ;;  %s910_s2 = inlined_call_operand.hbm [shape: f32[2,2,4,128], index: 2, kind: output, shape index: {}]  }
   0x1   :  { %9 = vsyncpa [#allocation3 + $0x1], 0 }
   0x2   :  { %10 = vsyncpa [#allocation6], 0 }
   0x3   :  { %12 = vsyncpa [#allocation6 + $0x1], 0 }
   0x4   :  { %13 = vsyncpa [#allocation4], 0 }
   0x5   :  { %15 = vsyncpa [#allocation4 + $0x1], 0  ;;  %s710_s9 = smov 0   ;;  %s712_s10 = smov 0  }
   0x6   :  { %s714_s11 = smov 0   ;;  %s716_s12 = smov 0  }
   0x7   :  { %s718_s13 = smov 0   ;;  %s720_s14 = smov 0  }
   0x8 LB: > { %s446_s15 = sadd.s32 4294967295, %s687_s14   ;;  %s447_s16 = sadd.s32 4294967294, %s687_s14   ;;  %s687_s14 = sphi %s720_s14, %s21_s14   ;;  %s683_s13 = sphi %s718_s13, %s922_s13   ;;  %s679_s12 = sphi %s716_s12, %s921_s12   ;;  %s675_s11 = sphi %s714_s11, %s920_s11   ;;  %s671_s10 = sphi %s712_s10, %s919_s10   ;;  %s667_s9 = sphi %s710_s9, %s918_s9  }
   0x9   : > { %s33_s17 = sadd.s32 1, %s683_s13  ;;  %s42_s18 = sadd.s32 1, %s675_s11 }
   0xa   : > { %p35_p0 = scmp.ge.s32.totalorder %s33_s17, 2  ;;  %p49_p1 = scmp.ne.s32.totalorder %s675_s11, %s671_s10 }
   0xb   : > { %p50_p2 = scmp.eq.s32.totalorder %s687_s14, 0  ;;  %p55_p3 = scmp.ne.s32.totalorder %s671_s10, %s667_s9 }
   0xc   : > { %s924_s17 = smov (%p35_p0, %s33_s17), 0  ;;  %p56_p5 = scmp.eq.s32.totalorder %s446_s15, 0 }
   0xd   : > { %p751_p4 = por %p50_p2, %p49_p1  ;;  %s37_s20 = ssub.s32 %s683_s13, %s924_s17 }
   0xe   : > { %p107_p6 = scmp.eq.s32.totalorder %s446_s15, 1  ;;  %p40_p7 = scmp.eq.s32.totalorder %s37_s20, 0 }
   0xf   : > { %p757_p8 = por %p56_p5, %p55_p3  ;;  %p113_p10 = scmp.eq.s32.totalorder %s447_s16, 1 }
  0x10   : > { %p761_p9 = por %p107_p6, %p49_p1  ;;  %p489_p13 = scmp.lt.s32.totalorder %s687_s14, 2 }
  0x11   : > { %s766_s23 = scalar_select %p40_p7, %s675_s11, %s42_s18  }
  0x12   : > { %p768_p11 = por %p113_p10, %p55_p3  ;;  %s775_s25 = sand.u32 1, %s675_s11  }
  0x13   : > { %s450_s26 = sshll.u32 %s775_s25, 3  ;;  %s469_s27 = sshll.u32 %s683_s13, 7 }
  0x14   : > { %s145_s30 = scalar_lea.hbm %s908_s0, %s469_s27  ;;  %s137_s3 = scalar_lea.vmem [#allocation2], %s450_s26 }
  0x15   : > { %s147_s4 = sshll.u32 %s137_s3, 4  ;;  %p784_p0 = pnand %p489_p13, %p751_p4  ;;  %s148_s4 = int_to_ptr.vmem [resolvable:$true] %s147_s4 }
  0x16   : > { %p456_p1 = scmp.ge.s32.totalorder %s687_s14, 1  ;;  %p173_p2 = scmp.lt.s32.totalorder %s687_s14, 3 }
  0x17   : > { %s134_s6 = scalar_lea.sflag [#allocation3], %s775_s25  ;;  %p549_p3 = pneg %p784_p0 }
  0x18   : > { %s560_s7 = scalar_lea.vmem %s148_s4, 128  ;;  %s689_s8 = smov [#allocation2]  }
  0x19   : > { %p561_p5 = scmp.ne.s32.totalorder %s148_s4, %s560_s7  ;;  %s565_s15 = sshll.u32 %s689_s8, 4  ;;  %s566_s15 = int_to_ptr.vmem [resolvable:$false] %s565_s15 }
  0x1a   : > { %s567_s16 = scalar_lea.vmem %s566_s15, 256  ;;  %p568_p4 = scmp.lt.s32.totalorder %s148_s4, %s566_s15 }
  0x1b   : > { %p563_p6 = pnand %p561_p5, %p549_p3  ;;  %p569_p10 = scmp.lt.s32.totalorder %s567_s16, %s560_s7 }
  0x1d   : > { %p564_p7 = pneg %p563_p6  ;;  %p570_p13 = por %p569_p10, %p568_p4 }
  0x1f   : > { %p571_p12 = pnand %p570_p13, %p564_p7 }
  0x21   : > { %574 = shalt.err (!%p571_p12)
}
  0x22   : > { %481 = dma.hbm_to_vmem [thread:$0]  (!%p784_p0), %s145_s30, 128, %s148_s4, %s134_s6  }
  0x23   : > { %p802_p5 = pnand %p456_p1, %p173_p2  ;;  %s453_s19 = sshll.u32 %s775_s25, 1 }
  0x24   : > { %s470_s20 = sshll.u32 %s683_s13, 5  ;;  %s158_s29 = scalar_lea.vmem [#allocation5], %s453_s19 }
  0x25   : > { %s166_s28 = scalar_lea.hbm %s909_s1, %s470_s20  ;;  %s168_s3 = sshll.u32 %s158_s29, 4  ;;  %s169_s3 = int_to_ptr.vmem [resolvable:$true] %s168_s3 }
  0x26   : > { %s155_s7 = scalar_lea.sflag [#allocation6], %s775_s25  ;;  %s588_s8 = scalar_lea.vmem %s169_s3, 32 }
  0x27   : > { %p589_p12 = scmp.ne.s32.totalorder %s169_s3, %s588_s8  ;;  %s690_s30 = smov [#allocation5]  }
  0x28   : > { %s593_s4 = sshll.u32 %s690_s30, 4  ;;  %s594_s4 = int_to_ptr.vmem [resolvable:$false] %s593_s4 }
  0x29   : > { %p591_p6 = pnand %p589_p12, %p549_p3  ;;  %s595_s6 = scalar_lea.vmem %s594_s4, 64 }
  0x2a   : > { %p596_p1 = scmp.lt.s32.totalorder %s169_s3, %s594_s4  ;;  %p597_p2 = scmp.lt.s32.totalorder %s595_s6, %s588_s8 }
  0x2b   : > { %p592_p7 = pneg %p591_p6 }
  0x2c   : > { %p598_p4 = por %p597_p2, %p596_p1 }
  0x2e   : > { %p599_p10 = pnand %p598_p4, %p592_p7 }
  0x30   : > { %602 = shalt.err (!%p599_p10)
}
  0x31   : > { %484 = dma.hbm_to_vmem [thread:$0]  (!%p784_p0), %s166_s28, 32, %s169_s3, %s155_s7  }
  0x32   : > { %177 = sbr.rel (%p802_p5) target bundleno = 293 (0x125), region = 28  ;;  %s820_s25 = sand.u32 (!%p802_p5), 1, %s671_s10  }
  0x33   : > { %s457_s15 = sshll.u32 (!%p802_p5), %s820_s25, 3  ;;  %s180_s16 = scalar_lea.sflag (!%p802_p5), [#allocation3], %s820_s25 }
  0x34   : > { %s183_s19 = scalar_lea.vmem (!%p802_p5), [#allocation2], %s457_s15 }
  0x37   : > { %654 = dma.done.wait (%p757_p8), %s180_s16, 128  }
  0x38   : > { %656 = vsyncadd (%p757_p8), %s180_s16, 4294967168  ;;  %s458_s5 = sshll.u32 %s820_s25, 1  ;;  %s189_s18 = scalar_lea.sflag [#allocation6], %s820_s25 }
  0x39   : > { %s830_s20 = scalar_lea.vmem [#allocation5], %s458_s5 }
  0x3a   : > { %658 = dma.done.wait (%p757_p8), %s189_s18, 32  }
  0x3b   : > { %660 = vsyncadd (%p757_p8), %s189_s18, 4294967264  ;;  %s836_s26 = scalar_lea.vmem [#allocation7], %s457_s15  ;;  %v691_v0 = vmov 0.0   ;;  %vm231_vm0 = vcmask 1043456   ;;  %v226_v1 = vld [vmem:[%s183_s19] sm:$0xff]  ;;  %v276_v31 = vlaneseq  ;;  %s471_s21 = sshll.u32 %s679_s12, 7 }
  0x3c   : > { %224 = vst [vmem:[%s836_s26] sm:$0xf] %v691_v0  ;;  %225 = vst [vmem:[%s836_s26 + $0x4] sm:$0xf] %v691_v0  ;;  %v229_v2 = vcombine.high %v226_v1, %v226_v1  ;;  %v232_v3 = vsel %vm231_vm0, %v226_v1, -inf  ;;  %v227_v41 = vld [vmem:[%s830_s20] sm:$0x3]  ;;  %s856_s3 = scalar_lea.hbm %s910_s2, %s471_s21 }
  0x3d   : > { %v233_v4 = vrot.slane %v232_v3, 4  ;;  %v277_v36 = vshrl.u32 %v276_v31, 7  ;;  %s336_s27 = sshll.u32 %s836_s26, 4  ;;  %s323_s7 = scalar_lea.sflag [#allocation4], %s820_s25  ;;  %s858_s27 = int_to_ptr.vmem [resolvable:$true] %s336_s27 }
  0x3e   : > { %v239_v5 = vsel %vm231_vm0, %v229_v2, -inf  ;;  %s603_s8 = scalar_lea.vmem %s858_s27, 128  ;;  %s692_s12 = smov [#allocation7]  }
  0x3f   : > { %v234_v6 = vmax.f32 %v232_v3, %v233_v4  ;;  %v240_v7 = vrot.slane %v239_v5, 4  ;;  %v280_v39 = vsub.s32 0, %v277_v36  ;;  %v284_v40 = vsub.s32 1, %v277_v36  ;;  %p604_p8 = scmp.ne.s32.totalorder %s858_s27, %s603_s8  ;;  %s607_s30 = sshll.u32 %s692_s12, 4  ;;  %s608_s30 = int_to_ptr.vmem [resolvable:$false] %s607_s30 }
  0x40   : > { %s609_s4 = scalar_lea.vmem %s608_s30, 256  ;;  %p610_p13 = scmp.lt.s32.totalorder %s858_s27, %s608_s30 }
  0x41   : > { %v235_v8 = vrot.slane %v234_v6, 2  ;;  %v241_v9 = vmax.f32 %v239_v5, %v240_v7  ;;  %v281_v42 = vrot.slane %v227_v41, %v280_v39  ;;  %v285_v43 = vrot.slane %v227_v41, %v284_v40  ;;  %p605_p0 = pnand %p604_p8, %p761_p9  ;;  %p611_p5 = scmp.lt.s32.totalorder %s609_s4, %s603_s8 }
  0x43   : > { %v236_v10 = vmax.f32 %v234_v6, %v235_v8  ;;  %v242_v11 = vrot.slane %v241_v9, 2  ;;  %vm286_vm1 = vcmp.eq.s32.totalorder %v281_v42, %v277_v36  ;;  %vm287_vm2 = vcmp.eq.s32.totalorder %v285_v43, %v277_v36  ;;  %v315_v60 = vld [vmem:[%s836_s26] sm:$0xf]  ;;  %v462_v62 = vld [vmem:[%s836_s26 + $0x4] sm:$0xf]  ;;  %p606_p3 = pneg %p605_p0  ;;  %p612_p12 = por %p611_p5, %p610_p13 }
  0x44   : > { %v460_v44 = vsel %vm286_vm1, 1.0, %v691_v0  ;;  %v461_v45 = vsel %vm287_vm2, 1.0, %v691_v0 }
  0x45   : > { %v237_v12 = vrot.slane %v236_v10, 1  ;;  %v243_v13 = vmax.f32 %v241_v9, %v242_v11  ;;  %v294_v46 = vcombine.low %v460_v44, %v461_v45  ;;  %p613_p6 = pnand %p612_p12, %p606_p3 }
  0x47   : > { %v238_v14 = vmax.f32 %v236_v10, %v237_v12  ;;  %v244_v15 = vrot.slane %v243_v13, 1 }
  0x49   : > { %v245_v16 = vmax.f32 %v243_v13, %v244_v15 }
  0x4b   : > { %v248_v17 = vcombine.low %v238_v14, %v245_v16 }
  0x4d   : > { %v250_v18 = vsub.f32 %v226_v1, %v248_v17 }
  0x4f   : > { %v251_v19 = vmul.f32 1.442695, %v250_v18 }
  0x51   : > { %543 = vpow2.f32 %v251_v19 }
  0x5e   : > { %v544_v20 = vpop.eup %543 }
  0x5f   : > { %v254_v21 = vcombine.high %v544_v20, %v544_v20  ;;  %v256_v22 = vsel %vm231_vm0, %v544_v20, 0.0 }
  0x60   : > { %v257_v23 = vrot.slane %v256_v22, 4 }
  0x61   : > { %v263_v24 = vsel %vm231_vm0, %v254_v21, 0.0 }
  0x62   : > { %v258_v25 = vadd.f32 %v257_v23, %v256_v22  ;;  %v264_v26 = vrot.slane %v263_v24, 4 }
  0x64   : > { %v259_v27 = vrot.slane %v258_v25, 2  ;;  %v265_v28 = vadd.f32 %v264_v26, %v263_v24 }
  0x66   : > { %v260_v29 = vadd.f32 %v259_v27, %v258_v25  ;;  %v266_v30 = vrot.slane %v265_v28, 2 }
  0x68   : > { %v261_v32 = vrot.slane %v260_v29, 1  ;;  %v267_v33 = vadd.f32 %v266_v30, %v265_v28 }
  0x6a   : > { %v262_v34 = vadd.f32 %v261_v32, %v260_v29  ;;  %v268_v35 = vrot.slane %v267_v33, 1 }
  0x6c   : > { %v269_v37 = vadd.f32 %v268_v35, %v267_v33 }
  0x6e   : > { %v272_v38 = vcombine.low %v262_v34, %v269_v37 }
  0x70   : > { %545 = vrcp.f32 %v272_v38 }
  0x7d   : > { %v546_v47 = vpop.eup %545 }
  0x7e   : > { %v275_v48 = vmul.f32 %v546_v47, %v544_v20 }
  0x80   : > { %v296_v49 = vmul.f32 %v294_v46, %v275_v48  ;;  %v306_v50 = vadd.f32 %v294_v46, %v275_v48 }
  0x82   : > { %v298_v51 = vcombine.high %v296_v49, %v296_v49  ;;  %v300_v52 = vsel %vm231_vm0, %v296_v49, 0.0  ;;  %v308_v53 = vcombine.high %v306_v50, %v306_v50  ;;  %v310_v55 = vsel %vm231_vm0, %v306_v50, 0.0 }
  0x84   : > { %v301_v54 = vsel %vm231_vm0, %v298_v51, 0.0  ;;  %v311_v56 = vsel %vm231_vm0, %v308_v53, 0.0 }
  0x85   : > { %v302_v57 = vadd.f32 %v301_v54, %v300_v52  ;;  %v312_v58 = vadd.f32 %v311_v56, %v310_v55 }
  0x87   : > { %303 = vadd.xlane.f32.xlu0 %v302_v57 }
  0x8b   : > { %313 = vadd.xlane.f32.xlu0 %v312_v58 }
 0x110   : > { %v304_v59 = vpop.xlane.xlu0 %303 }
 0x111   : > { %v305_v61 = vmul.f32 2.0, %v304_v59 }
 0x113   : > { %v316_v63 = vadd.f32 %v315_v60, %v305_v61 }
 0x114   : > { %v314_v0 = vpop.xlane.xlu0 %313 }
 0x115   : > { %317 = vst [vmem:[%s836_s26] sm:$0xf] %v316_v63  ;;  %v320_v1 = vadd.f32 %v462_v62, %v314_v0 }
 0x117   : > { %463 = vst [vmem:[%s836_s26 + $0x4] sm:$0xf] %v320_v1 }
 0x118   : > { %616 = shalt.err (!%p613_p6)
}
 0x119   : > { %s617_s6 = scalar_lea.hbm %s856_s3, 128  ;;  %s621_s19 = scalar_lea.hbm %s910_s2, 256 }
 0x11a   : > { %p618_p7 = scmp.ne.s32.totalorder %s856_s3, %s617_s6  ;;  %p622_p4 = scmp.lt.s32.totalorder %s856_s3, %s910_s2 }
 0x11b   : > { %p623_p10 = scmp.lt.s32.totalorder %s621_s19, %s617_s6 }
 0x11c   : > { %p619_p1 = pnand %p618_p7, %p761_p9 }
 0x11d   : > { %p624_p8 = por %p623_p10, %p622_p4 }
 0x11e   : > { %p620_p2 = pneg %p619_p1 }
 0x120   : > { %p625_p0 = pnand %p624_p8, %p620_p2 }
 0x122   : > { %628 = shalt.err (!%p625_p0)
}
 0x123   : > { %s693_s20 = smov 64   ;;  %s694_s26 = smov 4  }
 0x124   : > { %476 = dma.vmem_to_hbm [thread:$0]  (%p761_p9), %s858_s27, 128, %s856_s3, %s323_s7, %s693_s20, %s693_s20, %s694_s26  }
 0x125 PF: > { %s351_s21 = sand.u32 1, %s667_s9   ;;  %p917_p3 = scmp.ge.s32.totalorder %s687_s14, 2 }
 0x126   : > { %s352_s28 = scalar_lea.sflag [#allocation4], %s351_s21 }
 0x127   : > { %p486_p13 = pnand %p917_p3, %p768_p11 }
 0x129   : > { %p487_p5 = pneg %p486_p13 }
 0x12b   : > { %662 = dma.done.wait (%p487_p5), %s352_s28, 128  }
 0x12c   : > { %664 = vsyncadd (%p487_p5), %s352_s28, 4294967168  ;;  %s21_s14 = sadd.s32 1, %s687_s14   ;;  %s918_s9 = smov %s671_s10 }
 0x12d   : > { %p18_p12 = scmp.ge.s32.totalorder %s21_s14, 4   ;;  %s919_s10 = smov %s675_s11 }
 0x12e   : > { %s920_s11 = smov %s766_s23  ;;  %s921_s12 = smov %s683_s13 }
 0x12f   : > { %s922_s13 = smov %s924_s17  ;;  %20 = sbr.rel (!%p18_p12) target bundleno = 8 (0x8), region = 91 }
 0x134   :  { %357 = vsyncpa [#allocation3], 1 }
 0x135   :  { %359 = vsyncpa [#allocation3 + $0x1], 1 }
 0x136   :  { %360 = vsyncpa [#allocation6], 1 }
 0x137   :  { %362 = vsyncpa [#allocation6 + $0x1], 1 }
 0x138   :  { %363 = vsyncpa [#allocation4], 1 }
 0x139   :  { %365 = vsyncpa [#allocation4 + $0x1], 1 }

</bundles_post_ra>
